<compile_context>
chip_gen: v7x
topology: tpu7x:2x2x1
jax: 0.10.0
libtpu: 0.0.40
codegen_flags: <defaults>
</compile_context>

<pallas_src>
import jax
import jax.numpy as jnp
from jax.experimental import pallas as pl
from jax.experimental.pallas import tpu as pltpu


def _round_up(x, m):
    return ((x + m - 1) // m) * m


def _normalize_kernel(x_ref, scale_ref, bias_ref, o_ref):
    # x_ref: (bm, bc) tile; scale_ref / bias_ref: (bm, 1) per-row stats.
    x = x_ref[...].astype(jnp.float32)
    s = scale_ref[...]                     # (bm, 1), broadcasts over lanes
    b = bias_ref[...]                      # (bm, 1)
    o_ref[...] = (x * s + b).astype(o_ref.dtype)


def _pick_budget():
    """Tile-byte target and scoped-VMEM limit; bigger tiles on v7x-class HW."""
    target_bytes = 4 * 1024 * 1024
    vmem_limit = 32 * 1024 * 1024
    try:
        info = pltpu.get_tpu_info()
        vmem_cap = getattr(info, "vmem_capacity_bytes", None)
        if vmem_cap is not None and vmem_cap <= 64 * 1024 * 1024:
            # v7x-class: 64 MiB VMEM but ~3.2 TB/s HBM -> amortize step overhead.
            target_bytes = 8 * 1024 * 1024
            vmem_limit = 48 * 1024 * 1024
    except Exception:
        pass
    return target_bytes, vmem_limit


def normalization_forward(img, mean, std, *, block_rows=None, block_cols=None):
    """img: (N, C, H, W); mean/std: (C,).  Returns (img - mean)/std in NCHW."""
    N, C, H, W = img.shape
    R = N * C
    HW = H * W
    dtype = img.dtype
    itemsize = jnp.dtype(dtype).itemsize
    # Sublane packing: 8 rows for 32-bit, 16 for bf16/fp16, 32 for 8-bit.
    sub_mult = max(8, 32 // max(1, itemsize))

    target_bytes, vmem_limit = _pick_budget()

    # Fold stats: out = x * scale + bias  with  scale = 1/std, bias = -mean/std.
    scale_c = (1.0 / std).astype(jnp.float32)
    bias_c = (-mean / std).astype(jnp.float32)
    scale_r = jnp.tile(scale_c, N).reshape(R, 1)   # per-row column (R, 1), f32
    bias_r = jnp.tile(bias_c, N).reshape(R, 1)

    # ---- tile sizing -------------------------------------------------------
    if block_cols is None:
        if HW % 128 == 0 and HW * sub_mult * itemsize <= target_bytes:
            # Full-row stripes: one contiguous HBM descriptor per block DMA.
            block_cols = HW
        else:
            block_cols = min(_round_up(HW, 128), 4096)
    else:
        block_cols = _round_up(block_cols, 128)

    if block_rows is None:
        target_rows = max(1, target_bytes // (block_cols * itemsize))
        block_rows = max(sub_mult, _round_up(target_rows, sub_mult))
    else:
        block_rows = max(sub_mult, _round_up(block_rows, sub_mult))
    block_rows = min(block_rows, _round_up(R, sub_mult))

    # v7x megacore: make sure there are >=2 parallel blocks when possible.
    if pl.cdiv(R, block_rows) * pl.cdiv(HW, block_cols) < 2:
        half = _round_up(max(1, (R + 1) // 2), sub_mult)
        if half < R:
            block_rows = half

    grid = (pl.cdiv(R, block_rows), pl.cdiv(HW, block_cols))

    x2 = img.reshape(R, HW)

    out2 = pl.pallas_call(
        _normalize_kernel,
        out_shape=jax.ShapeDtypeStruct((R, HW), dtype),
        grid_spec=pltpu.PrefetchScalarGridSpec(
            num_scalar_prefetch=0,
            grid=grid,
            in_specs=[
                pl.BlockSpec((block_rows, block_cols), lambda i, j: (i, j)),
                # Per-block stats: tiny, deduplicated across the inner j axis.
                pl.BlockSpec((block_rows, 1), lambda i, j: (i, 0)),
                pl.BlockSpec((block_rows, 1), lambda i, j: (i, 0)),
            ],
            out_specs=pl.BlockSpec((block_rows, block_cols), lambda i, j: (i, j)),
        ),
        compiler_params=pltpu.CompilerParams(
            dimension_semantics=("parallel", "parallel"),
            vmem_limit_bytes=vmem_limit,
        ),
    )(x2, scale_r, bias_r)

    return out2.reshape(N, C, H, W)


if __name__ == "__main__":
    key = jax.random.PRNGKey(0)
    k_img, _ = jax.random.split(key)

    N, C, H, W = 2, 4, 16, 16
    img = jax.random.uniform(k_img, (N, C, H, W), dtype=jnp.float32)

    # Deterministic "ImageNet-like" per-channel stats for C=4 channels.
    mean = jnp.array([0.485, 0.456, 0.406, 0.5], dtype=jnp.float32)
    std = jnp.array([0.229, 0.224, 0.225, 0.25], dtype=jnp.float32)

    out = normalization_forward(img, mean, std)
    out = jax.block_until_ready(out)

    # Reference: (img - mean.view(-1,1,1)) / std.view(-1,1,1)
    ref = (img - mean.reshape(-1, 1, 1)) / std.reshape(-1, 1, 1)
    assert out.shape == (N, C, H, W)
    assert jnp.allclose(out, ref, atol=1e-5, rtol=1e-5), float(
        jnp.max(jnp.abs(out - ref))
    )

    print("KERNEL_OK")
</pallas_src>

<mosaic_0001>
module attributes {stable_mosaic.version = 11 : i64} {
  func.func @_normalize_kernel(%arg0: i32, %arg1: i32, %arg2: memref<8x256xf32, #tpu.memory_space<vmem>>, %arg3: memref<8x1xf32, #tpu.memory_space<vmem>>, %arg4: memref<8x1xf32, #tpu.memory_space<vmem>>, %arg5: memref<8x256xf32, #tpu.memory_space<vmem>>) attributes {dimension_semantics = [#tpu.dimension_semantics<parallel>, #tpu.dimension_semantics<parallel>], iteration_bounds = array<i64: 1, 1>, scalar_prefetch = 0 : i64, scratch_operands = 0 : i64, tpu.core_type = #tpu.core_type<tc>, window_params = [{transform_indices = @transform_0, window_bounds = array<i64: 8, 256>}, {transform_indices = @transform_1, window_bounds = array<i64: 8, 1>}, {transform_indices = @transform_2, window_bounds = array<i64: 8, 1>}, {transform_indices = @transform_3, window_bounds = array<i64: 8, 256>}]} {
    %c0 = arith.constant 0 : index
    %c0_0 = arith.constant 0 : index
    %0 = vector.load %arg2[%c0, %c0_0] : memref<8x256xf32, #tpu.memory_space<vmem>>, vector<8x256xf32>
    %c0_1 = arith.constant 0 : index
    %c0_2 = arith.constant 0 : index
    %1 = vector.load %arg3[%c0_1, %c0_2] : memref<8x1xf32, #tpu.memory_space<vmem>>, vector<8x1xf32>
    %c0_3 = arith.constant 0 : index
    %c0_4 = arith.constant 0 : index
    %2 = vector.load %arg4[%c0_3, %c0_4] : memref<8x1xf32, #tpu.memory_space<vmem>>, vector<8x1xf32>
    %3 = vector.broadcast %1 : vector<8x1xf32> to vector<8x256xf32>
    %4 = arith.mulf %0, %3 : vector<8x256xf32>
    %5 = vector.broadcast %2 : vector<8x1xf32> to vector<8x256xf32>
    %6 = arith.addf %4, %5 : vector<8x256xf32>
    %c0_5 = arith.constant 0 : index
    %c0_6 = arith.constant 0 : index
    %7 = vector.load %arg5[%c0_5, %c0_6] : memref<8x256xf32, #tpu.memory_space<vmem>>, vector<8x256xf32>
    tpu.vector_store %arg5[%c0_5, %c0_6], %6 {strides = array<i32>} : memref<8x256xf32, #tpu.memory_space<vmem>>, vector<8x256xf32>,
    return
  }
  func.func @transform_0(%arg0: i32, %arg1: i32) -> (i32, i32) {
    %c0_i32 = arith.constant 0 : i32
    return %arg0, %arg1 : i32, i32
  }
  func.func @transform_1(%arg0: i32, %arg1: i32) -> (i32, i32) {
    %c0_i32 = arith.constant 0 : i32
    %c0_i32_0 = arith.constant 0 : i32
    return %arg0, %c0_i32 : i32, i32
  }
  func.func @transform_2(%arg0: i32, %arg1: i32) -> (i32, i32) {
    %c0_i32 = arith.constant 0 : i32
    %c0_i32_0 = arith.constant 0 : i32
    return %arg0, %c0_i32 : i32, i32
  }
  func.func @transform_3(%arg0: i32, %arg1: i32) -> (i32, i32) {
    %c0_i32 = arith.constant 0 : i32
    return %arg0, %arg1 : i32, i32
  }
}

</mosaic_0001>

<bundles_post_ra>
// kernel: tpu_custom_call.1
= control target key start
LH: loop header
LB: loop body
LE: loop exit
PB: predicated region body
PF: predicated region fallthrough
CT: control target
= control target key end

     0   :  { %s122_s0 = inlined_call_operand.vmem [shape: f32[8,256], index: 0, kind: input, shape index: {}]   ;;  %s123_s1 = inlined_call_operand.vmem [shape: f32[8,1], index: 1, kind: input, shape index: {}]   ;;  %s124_s2 = inlined_call_operand.vmem [shape: f32[8,1], index: 2, kind: input, shape index: {}]   ;;  %s125_s3 = inlined_call_operand.hbm [shape: f32[8,256], index: 3, kind: output, shape index: {}]  }
   0x1   :  { %v17_v0 = vld [vmem:[%s123_s1] sm:$0xff] }
   0x2   :  { %8 = vsyncpa [#allocation3], 0  ;;  %v76_v1 = vmov 0   ;;  %v18_v2 = vld [vmem:[%s124_s2] sm:$0xff]  ;;  %v16_v5 = vld [vmem:[%s122_s0 + $0x8] sm:$0xff]  ;;  %s77_s20 = smov [#allocation2]  }
   0x3   :  { %51 = vset.pattern.permute.xlu0 %v76_v1  ;;  %v15_v4 = vld [vmem:[%s122_s0] sm:$0xff]  ;;  %s41_s1 = sshll.u32 %s77_s20, 4  ;;  %s42_s1 = int_to_ptr.vmem [resolvable:$true] %s41_s1 }
   0x4   :  { %21 = vperm.xlu0 %51, %v17_v0   ;;  %s52_s2 = scalar_lea.vmem %s42_s1, 256  ;;  %p57_p1 = scmp.lt.s32.totalorder %s42_s1, %s42_s1 }
   0x5   :  { %p53_p0 = scmp.ne.s32.totalorder %s42_s1, %s52_s2  ;;  %p58_p2 = scmp.lt.s32.totalorder %s52_s2, %s52_s2 }
   0x7   :  { %p59_p3 = por %p58_p2, %p57_p1 }
   0x8   :  { %28 = vperm.xlu0 %51, %v18_v2  }
   0x9   :  { %p60_p4 = pnand %p59_p3, %p53_p0 }
  0x83   :  { %v22_v3 = vpop.permute.xlu0 %21 }
  0x84   :  { %v24_v6 = vmul.f32 %v22_v3, %v15_v4  ;;  %v25_v7 = vmul.f32 %v22_v3, %v16_v5 }
  0x87   :  { %v29_v8 = vpop.permute.xlu0 %28 }
  0x88   :  { %v31_v9 = vadd.f32 %v29_v8, %v24_v6  ;;  %v32_v10 = vadd.f32 %v29_v8, %v25_v7 }
  0x8a   :  { %33 = vst [vmem:[#allocation2] sm:$0xff] %v31_v9  ;;  %34 = vst [vmem:[#allocation2 + $0x8] sm:$0xff] %v32_v10 }
  0x8b   :  { %63 = shalt.err (!%p60_p4)
}
  0x8c   :  { %s64_s0 = scalar_lea.hbm %s125_s3, 256 }
  0x8d   :  { %p65_p5 = scmp.ne.s32.totalorder %s125_s3, %s64_s0  ;;  %p68_p6 = scmp.lt.u32.totalorder %s64_s0, %s125_s3 }
  0x8f   :  { %p70_p7 = pnand %p68_p6, %p65_p5 }
  0x91   :  { %73 = shalt.err (!%p70_p7)
}
  0x92   :  { %44 = dma.vmem_to_hbm [thread:$0]  %s42_s1, 256, %s125_s3, [#allocation3]  }
  0x93   :  { %74 = dma.done.wait [#allocation3], 256  }
  0x94   :  { %75 = vsyncadd [#allocation3], 4294967040 }
  0x95   :  { %48 = vsyncpa [#allocation3], 1 }

</bundles_post_ra>
